<compile_context>
chip_gen: v5e
topology: v5e:2x2
jax: 0.10.0
libtpu: 0.0.40
codegen_flags: <defaults>
</compile_context>

<pallas_src>
import functools

import jax
import jax.numpy as jnp
from jax.experimental import pallas as pl
from jax.experimental.pallas import tpu as pltpu

LN_EPS = 1e-5


def _patch_merging_kernel(xe_ref, xo_ref, we_ref, wo_ref, sb_ref, o_ref, *, inv_4c):
    """One grid step: `tb` image row-pairs -> tb * W2 merged patches.

    xe_ref : (tb, W2, 2C)  even image rows, channel order [x0 | x2]
    xo_ref : (tb, W2, 2C)  odd  image rows, channel order [x1 | x3]
    we_ref : (2C, 2C)      gamma-folded weight rows for the even-row channels
    wo_ref : (2C, 2C)      gamma-folded weight rows for the odd-row channels
    sb_ref : (2, 2C)  f32  row 0 = colsum(We)+colsum(Wo), row 1 = beta @ W
    o_ref  : (tb*W2, 2C)
    """
    tb, w2, c2 = xe_ref.shape
    rows = tb * w2

    xe = xe_ref[...].reshape(rows, c2)
    xo = xo_ref[...].reshape(rows, c2)

    # LayerNorm statistics over the full 4C channels (= union of xe and xo).
    # One pass, f32 accumulation: var = E[x^2] - mean^2.
    xe32 = xe.astype(jnp.float32)
    xo32 = xo.astype(jnp.float32)
    s1 = (jnp.sum(xe32, axis=-1, keepdims=True)
          + jnp.sum(xo32, axis=-1, keepdims=True))
    s2 = (jnp.sum(xe32 * xe32, axis=-1, keepdims=True)
          + jnp.sum(xo32 * xo32, axis=-1, keepdims=True))
    mean = s1 * inv_4c
    var = jnp.maximum(s2 * inv_4c - mean * mean, 0.0)
    inv = jax.lax.rsqrt(var + LN_EPS)

    # Matmul on the UNCENTERED activations straight from the input refs.
    # ((x - mean) @ W) == x @ W - mean * colsum(W), so the mean is removed in
    # the epilogue; the per-row 1/std commutes with the matmul.
    cd = we_ref.dtype
    acc = jnp.dot(xe.astype(cd), we_ref[...], preferred_element_type=jnp.float32)
    acc = acc + jnp.dot(xo.astype(cd), wo_ref[...], preferred_element_type=jnp.float32)

    sb = sb_ref[...]
    wsum = sb[0:1, :]
    bias = sb[1:2, :]
    o_ref[...] = ((acc - mean * wsum) * inv + bias).astype(o_ref.dtype)


def _default_vmem_limit_bytes():
    """~Half of the per-core VMEM (<=32 MiB on v7x, ~64 MiB on v5e/v6e)."""
    cap = None
    try:
        cap = int(getattr(pltpu.get_tpu_info(), "vmem_capacity_bytes", 0)) or None
    except Exception:
        cap = None
    if cap is None:
        cap = 64 * 1024 * 1024  # conservative: v7x per-core VMEM
    return int(max(16 * 1024 * 1024, min(cap // 2, 96 * 1024 * 1024)))


def _pick_tile(bh2, w2, c2, in_itemsize, out_itemsize, compute_itemsize,
               target_rows, vmem_budget):
    """Number of image row-pairs per grid step, under an honest VMEM budget."""
    n_rows_full = bh2 * w2
    # Preferred sublane granularity of the output block (dtype-aware packing).
    sub_pref = max(8, 32 // max(1, out_itemsize))   # f32: 8, bf16: 16, int8: 32

    # Constant VMEM cost: the two weight blocks (double-buffered) + fold vector.
    const_bytes = 2 * 2 * c2 * c2 * compute_itemsize + 2 * 2 * c2 * 4

    def legal(t, sub):
        rows = t * w2
        return bh2 % t == 0 and (rows % sub == 0 or rows == n_rows_full)

    def fits(t):
        rows = t * w2
        blk_in = rows * c2 * in_itemsize           # one even/odd slab
        blk_out = rows * c2 * out_itemsize
        f32_tmp = 4 * rows * c2 * 4                # xe32/xo32/acc/epilogue temps
        return const_bytes + 2 * 2 * blk_in + 2 * blk_out + f32_tmp <= vmem_budget

    # >= 4 grid steps when possible (>= 2 per v7x TensorCore), plus a soft
    # target on output rows per step.
    t_cap = bh2 // 4 if bh2 >= 4 else bh2
    t_cap = max(1, min(t_cap, max(1, target_rows // max(1, w2))))

    for sub in (sub_pref, 8):
        for t in range(t_cap, 0, -1):
            if legal(t, sub) and fits(t):
                return t
    # Last resort: smallest hardware-legal tile even if it busts the soft budget.
    for t in range(1, bh2 + 1):
        if legal(t, 8):
            return t
    return bh2


def patch_merging(x, gamma, beta, reduction_weight, input_resolution, *,
                  compute_dtype=jnp.bfloat16, out_dtype=None,
                  target_rows=2048, vmem_limit_bytes=None):
    """
    x: (B, H*W, C)   -- pass bf16 activations when the surrounding model runs
                        in bf16; the kernel is HBM-bandwidth bound so halving
                        the I/O bytes is ~a 2x wall-clock win.
    gamma, beta: (4C,)           -- LayerNorm(4*dim) params
    reduction_weight: (2C, 4C)   -- torch nn.Linear(4C, 2C, bias=False).weight
    returns: (B, (H/2)*(W/2), 2C) in `out_dtype` (default: x.dtype)
    """
    H, W = input_resolution
    B, L, C = x.shape
    assert L == H * W, "input feature has wrong size"
    assert H % 2 == 0 and W % 2 == 0, f"x size ({H}*{W}) are not even."

    H2, W2 = H // 2, W // 2
    BH2 = B * H2
    C2, C4 = 2 * C, 4 * C
    N = BH2 * W2
    out_dtype = x.dtype if out_dtype is None else jnp.dtype(out_dtype)

    # FREE contiguous reshape: (B, H*W, C) -> (B*H/2, 2, W/2, 2C).
    # Axis 1 is the even/odd image row; the last axis is [col-even C | col-odd C].
    xr = x.reshape(BH2, 2, W2, C2)

    # Fold LayerNorm gamma into the reduction weight and beta into a 2C bias;
    # split the weight rows into the even-row ([x0; x2]) and odd-row ([x1; x3])
    # channel groups matching xr's natural memory order.
    # PyTorch channel order: [x0, x1, x2, x3] = [(r0,c0), (r1,c0), (r0,c1), (r1,c1)].
    w = reduction_weight.astype(jnp.float32).T                       # (4C, 2C)
    wg = gamma.astype(jnp.float32)[:, None] * w                      # gamma folded
    bias = beta.astype(jnp.float32) @ w                              # (2C,)
    we = jnp.concatenate([wg[0:C], wg[2 * C:3 * C]], axis=0).astype(compute_dtype)
    wo = jnp.concatenate([wg[C:2 * C], wg[3 * C:4 * C]], axis=0).astype(compute_dtype)
    # Column sums of the weights *as the MXU sees them* (for the epilogue
    # mean-subtraction), stacked with the folded bias into one (2, 2C) operand.
    wsum = (jnp.sum(we.astype(jnp.float32), axis=0)
            + jnp.sum(wo.astype(jnp.float32), axis=0))
    sumbias = jnp.stack([wsum, bias], axis=0)                        # (2, 2C) f32

    if vmem_limit_bytes is None:
        vmem_limit_bytes = _default_vmem_limit_bytes()
    compute_itemsize = jnp.dtype(compute_dtype).itemsize
    tb = _pick_tile(BH2, W2, C2, x.dtype.itemsize, out_dtype.itemsize,
                    compute_itemsize, target_rows, int(vmem_limit_bytes * 0.75))
    grid = (BH2 // tb,)

    out = pl.pallas_call(
        functools.partial(_patch_merging_kernel, inv_4c=1.0 / C4),
        out_shape=jax.ShapeDtypeStruct((N, C2), out_dtype),
        grid_spec=pltpu.PrefetchScalarGridSpec(
            num_scalar_prefetch=0,
            grid=grid,
            in_specs=[
                # Even / odd image-row slabs of the SAME array: the DMA engine
                # does the 2x2 row de-interleave (no in-kernel slice copies).
                pl.BlockSpec((tb, pl.Squeezed(), W2, C2), lambda i: (i, 0, 0, 0)),
                pl.BlockSpec((tb, pl.Squeezed(), W2, C2), lambda i: (i, 1, 0, 0)),
                pl.BlockSpec((C2, C2), lambda i: (0, 0)),
                pl.BlockSpec((C2, C2), lambda i: (0, 0)),
                pl.BlockSpec((2, C2), lambda i: (0, 0)),
            ],
            out_specs=pl.BlockSpec((tb * W2, C2), lambda i: (i, 0)),
        ),
        compiler_params=pltpu.CompilerParams(
            dimension_semantics=("parallel",),   # row axis shards across v7x's 2 TCs
            vmem_limit_bytes=int(vmem_limit_bytes),
        ),
    )(xr, xr, we, wo, sumbias)

    return out.reshape(B, H2 * W2, C2)


def patch_merging_ref(x, gamma, beta, reduction_weight, input_resolution):
    """Pure-JAX reference matching the PyTorch forward exactly."""
    H, W = input_resolution
    B, L, C = x.shape
    xv = x.reshape(B, H, W, C)
    x0 = xv[:, 0::2, 0::2, :]
    x1 = xv[:, 1::2, 0::2, :]
    x2 = xv[:, 0::2, 1::2, :]
    x3 = xv[:, 1::2, 1::2, :]
    xm = jnp.concatenate([x0, x1, x2, x3], axis=-1).reshape(B, -1, 4 * C)
    mean = jnp.mean(xm, axis=-1, keepdims=True)
    var = jnp.mean((xm - mean) ** 2, axis=-1, keepdims=True)
    xn = (xm - mean) / jnp.sqrt(var + LN_EPS) * gamma + beta
    return jnp.einsum("bnk,ok->bno", xn, reduction_weight)


if __name__ == "__main__":
    # Small shapes consistent with the module: B=2, H=W=16, dim=C=16.
    B, H, W, dim = 2, 16, 16, 16
    key = jax.random.PRNGKey(0)
    kx, kg, kb, kw = jax.random.split(key, 4)

    x = jax.random.normal(kx, (B, H * W, dim), dtype=jnp.float32)

    # Synthetic params: norm = LayerNorm(4*dim); reduction = Linear(4*dim, 2*dim, bias=False).
    gamma = 1.0 + 0.05 * jax.random.normal(kg, (4 * dim,), dtype=jnp.float32)
    beta = 0.05 * jax.random.normal(kb, (4 * dim,), dtype=jnp.float32)
    reduction_weight = jax.random.normal(kw, (2 * dim, 4 * dim), dtype=jnp.float32) * (
        1.0 / jnp.sqrt(4.0 * dim))

    ref = patch_merging_ref(x, gamma, beta, reduction_weight, (H, W))

    # f32 MXU path (exercises a multi-step grid), tight check vs. the reference.
    out_f32 = patch_merging(x, gamma, beta, reduction_weight, (H, W),
                            compute_dtype=jnp.float32, target_rows=64)
    out_f32 = jax.block_until_ready(out_f32)
    assert out_f32.shape == (B, (H // 2) * (W // 2), 2 * dim)
    assert jnp.allclose(out_f32, ref, atol=1e-3, rtol=1e-3), "f32 mismatch vs reference"

    # bf16 end-to-end path ("model runs in bf16"): bf16 activations in, bf16 out,
    # f32 LayerNorm statistics and f32 matmul accumulation inside the kernel.
    x_bf16 = x.astype(jnp.bfloat16)
    out_bf16 = patch_merging(x_bf16, gamma, beta, reduction_weight, (H, W))
    out_bf16 = jax.block_until_ready(out_bf16)
    assert out_bf16.shape == (B, (H // 2) * (W // 2), 2 * dim)
    assert out_bf16.dtype == jnp.bfloat16
    assert jnp.allclose(out_bf16.astype(jnp.float32), ref, atol=1e-1, rtol=1e-1), \
        "bf16 mismatch vs reference"

    print("KERNEL_OK")
</pallas_src>

<mosaic_0001>
module attributes {stable_mosaic.version = 11 : i64} {
  func.func @_patch_merging_kernel(%arg0: i32, %arg1: memref<4x1x8x32xf32, #tpu.memory_space<vmem>>, %arg2: memref<4x1x8x32xf32, #tpu.memory_space<vmem>>, %arg3: memref<32x32xf32, #tpu.memory_space<vmem>>, %arg4: memref<32x32xf32, #tpu.memory_space<vmem>>, %arg5: memref<2x32xf32, #tpu.memory_space<vmem>>, %arg6: memref<32x32xf32, #tpu.memory_space<vmem>>) attributes {dimension_semantics = [#tpu.dimension_semantics<parallel>], iteration_bounds = array<i64: 4>, scalar_prefetch = 0 : i64, scratch_operands = 0 : i64, tpu.core_type = #tpu.core_type<tc>, window_params = [{transform_indices = @transform_0, window_bounds = array<i64: 4, 1, 8, 32>}, {transform_indices = @transform_1, window_bounds = array<i64: 4, 1, 8, 32>}, {pipeline_mode = #tpu.pipeline_mode<synchronous>, transform_indices = @transform_2, window_bounds = array<i64: 32, 32>}, {pipeline_mode = #tpu.pipeline_mode<synchronous>, transform_indices = @transform_3, window_bounds = array<i64: 32, 32>}, {pipeline_mode = #tpu.pipeline_mode<synchronous>, transform_indices = @transform_4, window_bounds = array<i64: 2, 32>}, {transform_indices = @transform_5, window_bounds = array<i64: 32, 32>}]} {
    %c0 = arith.constant 0 : index
    %c0_0 = arith.constant 0 : index
    %c0_1 = arith.constant 0 : index
    %c0_2 = arith.constant 0 : index
    %0 = vector.load %arg1[%c0, %c0_0, %c0_1, %c0_2] : memref<4x1x8x32xf32, #tpu.memory_space<vmem>>, vector<4x1x8x32xf32>
    %1 = vector.shape_cast %0 : vector<4x1x8x32xf32> to vector<4x8x32xf32>
    %2 = vector.shape_cast %1 : vector<4x8x32xf32> to vector<32x32xf32>
    %c0_3 = arith.constant 0 : index
    %c0_4 = arith.constant 0 : index
    %c0_5 = arith.constant 0 : index
    %c0_6 = arith.constant 0 : index
    %3 = vector.load %arg2[%c0_3, %c0_4, %c0_5, %c0_6] : memref<4x1x8x32xf32, #tpu.memory_space<vmem>>, vector<4x1x8x32xf32>
    %4 = vector.shape_cast %3 : vector<4x1x8x32xf32> to vector<4x8x32xf32>
    %5 = vector.shape_cast %4 : vector<4x8x32xf32> to vector<32x32xf32>
    %cst = arith.constant dense<0.000000e+00> : vector<32xf32>
    %6 = vector.multi_reduction <add>, %2, %cst [1] : vector<32x32xf32> to vector<32xf32>
    %7 = vector.shape_cast %6 : vector<32xf32> to vector<32x1xf32>
    %cst_7 = arith.constant dense<0.000000e+00> : vector<32xf32>
    %8 = vector.multi_reduction <add>, %5, %cst_7 [1] : vector<32x32xf32> to vector<32xf32>
    %9 = vector.shape_cast %8 : vector<32xf32> to vector<32x1xf32>
    %10 = arith.addf %7, %9 : vector<32x1xf32>
    %11 = arith.mulf %2, %2 : vector<32x32xf32>
    %cst_8 = arith.constant dense<0.000000e+00> : vector<32xf32>
    %12 = vector.multi_reduction <add>, %11, %cst_8 [1] : vector<32x32xf32> to vector<32xf32>
    %13 = vector.shape_cast %12 : vector<32xf32> to vector<32x1xf32>
    %14 = arith.mulf %5, %5 : vector<32x32xf32>
    %cst_9 = arith.constant dense<0.000000e+00> : vector<32xf32>
    %15 = vector.multi_reduction <add>, %14, %cst_9 [1] : vector<32x32xf32> to vector<32xf32>
    %16 = vector.shape_cast %15 : vector<32xf32> to vector<32x1xf32>
    %17 = arith.addf %13, %16 : vector<32x1xf32>
    %cst_10 = arith.constant 1.562500e-02 : f32
    %18 = vector.broadcast %cst_10 : f32 to vector<32x1xf32>
    %19 = arith.mulf %10, %18 : vector<32x1xf32>
    %cst_11 = arith.constant 1.562500e-02 : f32
    %20 = vector.broadcast %cst_11 : f32 to vector<32x1xf32>
    %21 = arith.mulf %17, %20 : vector<32x1xf32>
    %22 = arith.mulf %19, %19 : vector<32x1xf32>
    %23 = arith.subf %21, %22 : vector<32x1xf32>
    %cst_12 = arith.constant 0.000000e+00 : f32
    %24 = vector.broadcast %cst_12 : f32 to vector<32x1xf32>
    %25 = arith.maximumf %23, %24 : vector<32x1xf32>
    %cst_13 = arith.constant 9.99999974E-6 : f32
    %26 = vector.broadcast %cst_13 : f32 to vector<32x1xf32>
    %27 = arith.addf %25, %26 : vector<32x1xf32>
    %28 = math.rsqrt %27 : vector<32x1xf32>
    %c0_14 = arith.constant 0 : index
    %c0_15 = arith.constant 0 : index
    %29 = vector.load %arg3[%c0_14, %c0_15] : memref<32x32xf32, #tpu.memory_space<vmem>>, vector<32x32xf32>
    %cst_16 = arith.constant dense<0.000000e+00> : vector<32x32xf32>
    %30 = tpu.matmul %2, %29, %cst_16 {dimension_numbers = #tpu.dot_dimension_numbers<[1], [0], [0], [1], [0, 0, 1, 1], [], []>} : vector<32x32xf32>, vector<32x32xf32>, vector<32x32xf32> -> vector<32x32xf32>
    %c0_17 = arith.constant 0 : index
    %c0_18 = arith.constant 0 : index
    %31 = vector.load %arg4[%c0_17, %c0_18] : memref<32x32xf32, #tpu.memory_space<vmem>>, vector<32x32xf32>
    %cst_19 = arith.constant dense<0.000000e+00> : vector<32x32xf32>
    %32 = tpu.matmul %5, %31, %cst_19 {dimension_numbers = #tpu.dot_dimension_numbers<[1], [0], [0], [1], [0, 0, 1, 1], [], []>} : vector<32x32xf32>, vector<32x32xf32>, vector<32x32xf32> -> vector<32x32xf32>
    %33 = arith.addf %30, %32 : vector<32x32xf32>
    %c0_20 = arith.constant 0 : index
    %c0_21 = arith.constant 0 : index
    %34 = vector.load %arg5[%c0_20, %c0_21] : memref<2x32xf32, #tpu.memory_space<vmem>>, vector<2x32xf32>
    %35 = vector.extract_strided_slice %34 {offsets = [0, 0], sizes = [1, 32], strides = [1, 1]} : vector<2x32xf32> to vector<1x32xf32>
    %36 = vector.extract_strided_slice %34 {offsets = [1, 0], sizes = [1, 32], strides = [1, 1]} : vector<2x32xf32> to vector<1x32xf32>
    %37 = vector.broadcast %19 : vector<32x1xf32> to vector<32x32xf32>
    %38 = vector.broadcast %35 : vector<1x32xf32> to vector<32x32xf32>
    %39 = arith.mulf %37, %38 : vector<32x32xf32>
    %40 = arith.subf %33, %39 : vector<32x32xf32>
    %41 = vector.broadcast %28 : vector<32x1xf32> to vector<32x32xf32>
    %42 = arith.mulf %40, %41 : vector<32x32xf32>
    %43 = vector.broadcast %36 : vector<1x32xf32> to vector<32x32xf32>
    %44 = arith.addf %42, %43 : vector<32x32xf32>
    %c0_22 = arith.constant 0 : index
    %c0_23 = arith.constant 0 : index
    %45 = vector.load %arg6[%c0_22, %c0_23] : memref<32x32xf32, #tpu.memory_space<vmem>>, vector<32x32xf32>
    tpu.vector_store %arg6[%c0_22, %c0_23], %44 {strides = array<i32>} : memref<32x32xf32, #tpu.memory_space<vmem>>, vector<32x32xf32>,
    return
  }
  func.func @transform_0(%arg0: i32) -> (i32, i32, i32, i32) {
    %c0_i32 = arith.constant 0 : i32
    %c0_i32_0 = arith.constant 0 : i32
    %c0_i32_1 = arith.constant 0 : i32
    %c0_i32_2 = arith.constant 0 : i32
    return %arg0, %c0_i32, %c0_i32_0, %c0_i32_1 : i32, i32, i32, i32
  }
  func.func @transform_1(%arg0: i32) -> (i32, i32, i32, i32) {
    %c1_i32 = arith.constant 1 : i32
    %c0_i32 = arith.constant 0 : i32
    %c0_i32_0 = arith.constant 0 : i32
    %c0_i32_1 = arith.constant 0 : i32
    return %arg0, %c1_i32, %c0_i32, %c0_i32_0 : i32, i32, i32, i32
  }
  func.func @transform_2(%arg0: i32) -> (i32, i32) {
    %c0_i32 = arith.constant 0 : i32
    %c0_i32_0 = arith.constant 0 : i32
    %c0_i32_1 = arith.constant 0 : i32
    return %c0_i32, %c0_i32_0 : i32, i32
  }
  func.func @transform_3(%arg0: i32) -> (i32, i32) {
    %c0_i32 = arith.constant 0 : i32
    %c0_i32_0 = arith.constant 0 : i32
    %c0_i32_1 = arith.constant 0 : i32
    return %c0_i32, %c0_i32_0 : i32, i32
  }
  func.func @transform_4(%arg0: i32) -> (i32, i32) {
    %c0_i32 = arith.constant 0 : i32
    %c0_i32_0 = arith.constant 0 : i32
    %c0_i32_1 = arith.constant 0 : i32
    return %c0_i32, %c0_i32_0 : i32, i32
  }
  func.func @transform_5(%arg0: i32) -> (i32, i32) {
    %c0_i32 = arith.constant 0 : i32
    %c0_i32_0 = arith.constant 0 : i32
    return %arg0, %c0_i32 : i32, i32
  }
}

</mosaic_0001>

<bundles_post_ra>
// kernel: tpu_custom_call.1
= control target key start
LH: loop header
LB: loop body
LE: loop exit
PB: predicated region body
PF: predicated region fallthrough
CT: control target
= control target key end

     0   :  { %s1234_s0 = inlined_call_operand.hbm [shape: f32[16,2,8,32], index: 0, kind: input, shape index: {}]   ;;  %s1235_s1 = inlined_call_operand.hbm [shape: f32[16,2,8,32], index: 1, kind: input, shape index: {}]   ;;  %s1236_s2 = inlined_call_operand.hbm [shape: f32[32,32], index: 2, kind: input, shape index: {}]   ;;  %s1237_s3 = inlined_call_operand.hbm [shape: f32[32,32], index: 3, kind: input, shape index: {}]   ;;  %s1238_s4 = inlined_call_operand.vmem [shape: f32[2,32], index: 4, kind: input, shape index: {}]   ;;  %s1239_s5 = inlined_call_operand.vmem [shape: f32[128,32], index: 5, kind: output, shape index: {}]  }
   0x1   :  { %1242 = sst [smem:[#allocation13_spill]] %s1234_s0 }
   0x2   :  { %1243 = sst [smem:[#allocation14_spill]] %s1236_s2 }
   0x3   :  { %10 = vsyncpa [#allocation3], 0 }
   0x4   :  { %12 = vsyncpa [#allocation3 + $0x1], 0 }
   0x5   :  { %13 = vsyncpa [#allocation5], 0 }
   0x6   :  { %15 = vsyncpa [#allocation5 + $0x1], 0 }
   0x7   :  { %16 = vsyncpa [#allocation8], 0  ;;  %s1009_s18 = smov 0   ;;  %s1011_s19 = smov 0  }
   0x8   :  { %s1013_s20 = smov 0   ;;  %s1015_s21 = smov 0  }
   0x9 LB: > { %s1028_s22 = sadd.s32 4294967295, %s972_s21   ;;  %p42_p0 = scmp.ne.s32.totalorder %s964_s19, %s960_s18  ;;  %s972_s21 = sphi %s1015_s21, %s1254_s21   ;;  %s968_s20 = sphi %s1013_s20, %s1253_s20   ;;  %s964_s19 = sphi %s1011_s19, %s1252_s19   ;;  %s960_s18 = sphi %s1009_s18, %s1251_s18  }
   0xa   : > { %p43_p1 = scmp.eq.s32.totalorder %s1028_s22, 0  ;;  %p691_p2 = scmp.ge.s32.totalorder %s972_s21, 1 }
   0xb   : > { %p168_p3 = scmp.lt.s32.totalorder %s972_s21, 5  ;;  %s1245_s2 = sld [smem:[#allocation14_spill]] }
   0xc   : > { %p1036_p4 = por %p43_p1, %p42_p0  ;;  %s974_s28 = smov [#allocation6]  }
   0xd   : > { %p1043_p5 = pnand %p691_p2, %p168_p3  ;;  %s181_s29 = sshll.u32 %s974_s28, 4  ;;  %s182_s29 = int_to_ptr.vmem [resolvable:$true] %s181_s29 }
   0xe   : > { %s193_s7 = sshll.u32 %s1237_s3, 4  ;;  %s1240_s8 = smov 128   ;;  %s194_s7 = int_to_ptr.hbm [resolvable:$true] %s193_s7 }
   0xf   : > { %p742_p6 = pneg %p1043_p5  ;;  %s976_s9 = smov 8  }
  0x10   : > { %s977_s10 = smov [#allocation7]   ;;  %s1061_s12 = sadd.s32 1, %s972_s21  }
  0x11   : > { %s179_s26 = sshll.u32 %s1245_s2, 4  ;;  %p743_p7 = pnand %p742_p6, %p43_p1  ;;  %s180_s26 = int_to_ptr.hbm [resolvable:$true] %s179_s26 }
  0x12   : > { %s195_s11 = sshll.u32 %s977_s10, 4  ;;  %s29_s13 = sadd.s32 1, %s968_s20  ;;  %s196_s11 = int_to_ptr.vmem [resolvable:$true] %s195_s11 }
  0x13   : > { %745 = dma.hbm_to_vmem [thread:$0]  (!%p743_p7), %s180_s26, 512, %s182_s29, [#allocation5], %s1240_s8, %s1240_s8, %s976_s9  }
  0x14   : > { %748 = dma.hbm_to_vmem [thread:$0]  (!%p743_p7), %s194_s7, 512, %s196_s11, [#allocation8], %s1240_s8, %s1240_s8, %s976_s9  }
  0x15   : > { %s26_s14 = ssub.s32 %s972_s21, %s1061_s12  ;;  %p36_p8 = scmp.ne.s32.totalorder %s968_s20, %s964_s19 }
  0x16   : > { %p27_p9 = scmp.eq.s32.totalorder %s26_s14, 0  ;;  %p37_p10 = scmp.eq.s32.totalorder %s972_s21, 0 }
  0x17   : > { %p758_p11 = scmp.lt.s32.totalorder %s972_s21, 4  ;;  %s212_s15 = sand.u32 1, %s968_s20  }
  0x18   : > { %s1072_s16 = scalar_select %p27_p9, %s968_s20, %s29_s13  }
  0x19   : > { %p38_p12 = por %p37_p10, %p36_p8  ;;  %s1074_s17 = sshll.u32 %s212_s15, 5 }
  0x1a   : > { %s720_s18 = sshll.u32 %s972_s21, 6  ;;  %s1247_s0 = sld [smem:[#allocation13_spill]] }
  0x1b   : > { %s216_s29 = scalar_lea.vmem [#allocation2], %s1074_s17  ;;  %p1081_p13 = pnand %p758_p11, %p38_p12 }
  0x1c   : > { %s225_s30 = sshll.u32 %s216_s29, 4  ;;  %s617_s11 = scalar_lea.hbm %s1235_s1, %s720_s18  ;;  %s226_s30 = int_to_ptr.vmem [resolvable:$true] %s225_s30 }
  0x1d   : > { %s618_s13 = scalar_lea.hbm %s617_s11, 8  ;;  %s213_s14 = scalar_lea.sflag [#allocation3], %s212_s15 }
  0x1e   : > { %p870_p2 = pneg %p1081_p13 }
  0x20   : > { %s222_s26 = scalar_lea.hbm %s1247_s0, %s720_s18  ;;  %s873_s29 = scalar_lea.hbm %s1247_s0, 256 }
  0x21   : > { %s223_s28 = sshll.u32 %s222_s26, 4  ;;  %s224_s28 = int_to_ptr.hbm [resolvable:$true] %s223_s28 }
  0x22   : > { %s866_s8 = sshra.s32 %s224_s28, 4  ;;  %s867_s8 = int_to_ptr.hbm [resolvable:$true] %s866_s8 }
  0x23   : > { %s868_s24 = scalar_lea.hbm %s867_s8, 32  ;;  %p874_p7 = scmp.lt.s32.totalorder %s867_s8, %s1247_s0 }
  0x24   : > { %p869_p0 = scmp.ne.s32.totalorder %s867_s8, %s868_s24  ;;  %p875_p8 = scmp.lt.s32.totalorder %s873_s29, %s868_s24 }
  0x26   : > { %p871_p3 = pnand %p870_p2, %p869_p0  ;;  %p876_p9 = por %p875_p8, %p874_p7 }
  0x28   : > { %p872_p6 = pneg %p871_p3 }
  0x2a   : > { %p877_p10 = pnand %p876_p9, %p872_p6 }
  0x2c   : > { %880 = shalt.err (!%p877_p10)
}
  0x2d   : > { %s978_s15 = smov 256   ;;  %s1249_s18 = smov 128  }
  0x2e   : > { %752 = dma.hbm_to_vmem [thread:$0]  (!%p1081_p13), %s224_s28, 512, %s226_s30, %s213_s14, %s978_s15, %s1249_s18, %s976_s9  }
  0x2f   : > { %s247_s11 = sshll.u32 %s618_s13, 4  ;;  %s239_s25 = scalar_lea.vmem [#allocation4], %s1074_s17  ;;  %s248_s11 = int_to_ptr.hbm [resolvable:$true] %s247_s11 }
  0x30   : > { %s249_s26 = sshll.u32 %s239_s25, 4  ;;  %s235_s7 = sand.u32 1, %s972_s21   ;;  %s250_s26 = int_to_ptr.vmem [resolvable:$true] %s249_s26 }
  0x31   : > { %s236_s8 = scalar_lea.sflag [#allocation5], %s235_s7  ;;  %s896_s24 = sshra.s32 %s248_s11, 4  ;;  %s897_s24 = int_to_ptr.hbm [resolvable:$true] %s896_s24 }
  0x32   : > { %s898_s29 = scalar_lea.hbm %s897_s24, 32  ;;  %s903_s2 = scalar_lea.hbm %s1235_s1, 256 }
  0x33   : > { %p899_p11 = scmp.ne.s32.totalorder %s897_s24, %s898_s29  ;;  %p904_p3 = scmp.lt.s32.totalorder %s897_s24, %s1235_s1 }
  0x34   : > { %p905_p6 = scmp.lt.s32.totalorder %s903_s2, %s898_s29 }
  0x35   : > { %p901_p12 = pnand %p899_p11, %p870_p2 }
  0x36   : > { %p906_p7 = por %p905_p6, %p904_p3 }
  0x37   : > { %p902_p0 = pneg %p901_p12 }
  0x39   : > { %p907_p8 = pnand %p906_p7, %p902_p0 }
  0x3b   : > { %910 = shalt.err (!%p907_p8)
}
  0x3c   : > { %755 = dma.hbm_to_vmem [thread:$0]  (!%p1081_p13), %s248_s11, 512, %s250_s26, %s236_s8, %s978_s15, %s1249_s18, %s976_s9  }
  0x3d   : > { %261 = sbr.rel (%p1043_p5) target bundleno = 268 (0x10c), region = 40  ;;  %s263_s0 = sand.u32 (!%p1043_p5), 1, %s964_s19  }
  0x3e   : > { %s703_s21 = sshll.u32 (!%p1043_p5), %s263_s0, 5  ;;  %s264_s17 = scalar_lea.sflag (!%p1043_p5), [#allocation3], %s263_s0 }
  0x3f   : > { %s1121_s13 = scalar_lea.vmem (!%p1043_p5), [#allocation2], %s703_s21 }
  0x42   : > { %943 = dma.done.wait (%p1036_p4), %s264_s17, 512  }
  0x43   : > { %945 = vsyncadd (%p1036_p4), %s264_s17, 4294966784  ;;  %s273_s2 = sand.u32 1, %s1028_s22   ;;  %s1128_s9 = scalar_lea.vmem [#allocation4], %s703_s21 }
  0x44   : > { %s274_s6 = scalar_lea.sflag [#allocation5], %s273_s2 }
  0x45   : > { %947 = dma.done.wait (%p1036_p4), %s274_s6, 512  }
  0x46   : > { %949 = vsyncadd (%p1036_p4), %s274_s6, 4294966784 }
  0x47   : > { %951 = dma.done.wait (%p43_p1), [#allocation5], 512  }
  0x48   : > { %953 = vsyncadd (%p43_p1), [#allocation5], 4294966784 }
  0x49   : > { %955 = dma.done.wait (%p43_p1), [#allocation8], 512  }
  0x4a   : > { %957 = vsyncadd (%p43_p1), [#allocation8], 4294966784  ;;  %vm336_vm0 = vcmask 261120   ;;  %v472_v0 = vld [vmem:[#allocation7 + $0x18] sm:$0xff]  ;;  %v1143_v2 = vld [vmem:[%s1128_s9] sm:$0xff]  ;;  %s707_s14 = sshll.u32 %s1028_s22, 2 }
  0x4b   : > { %v468_v1 = vld [vmem:[#allocation6 + $0x18] sm:$0xff]  ;;  %497 = vmatpush.msra.mxu0 %v472_v0  ;;  %722 = vmatpush.msra.mxu2 %v472_v0  ;;  %v349_v3 = vsel %vm336_vm0, %v1143_v2, 0.0  ;;  %v330_v4 = vld [vmem:[%s1121_s13 + $0x10] sm:$0xff]  ;;  %v328_v5 = vld [vmem:[%s1121_s13] sm:$0xff]  ;;  %v381_v34 = vmul.f32 %v1143_v2, %v1143_v2  ;;  %p1197_p1 = scmp.lt.s32.totalorder %s707_s14, 15 }
  0x4c   : > { %v471_v6 = vld [vmem:[#allocation7 + $0x10] sm:$0xff]  ;;  %538 = vmatpush.msra.mxu1 %v468_v1  ;;  %726 = vmatpush.msra.mxu3 %v468_v1  ;;  %v343_v7 = vsel %vm336_vm0, %v330_v4, 0.0  ;;  %v337_v8 = vsel %vm336_vm0, %v328_v5, 0.0  ;;  %v470_v10 = vld [vmem:[#allocation7 + $0x8] sm:$0xff]  ;;  %v469_v12 = vld [vmem:[#allocation7] sm:$0xff]  ;;  %v365_v21 = vmul.f32 %v328_v5, %v328_v5  ;;  %v367_v27 = vmul.f32 %v330_v4, %v330_v4 }
  0x4d   : > { %v467_v9 = vld [vmem:[#allocation6 + $0x10] sm:$0xff]  ;;  %350 = vadd.xlane.f32.xlu2 %v349_v3  ;;  %344 = vadd.xlane.f32.xlu1 %v343_v7  ;;  %v466_v11 = vld [vmem:[#allocation6 + $0x8] sm:$0xff]  ;;  %v465_v13 = vld [vmem:[#allocation6] sm:$0xff]  ;;  %v385_v37 = vsel %vm336_vm0, %v381_v34, 0.0  ;;  %s1256_s14 = smov (!%p1197_p1, %s707_s14), 15 }
  0x4e   : > { %338 = vadd.xlane.f32.xlu0 %v337_v8  ;;  %498 = vmatpush.msra.mxu0 %v471_v6  ;;  %v333_v14 = vld [vmem:[%s1128_s9 + $0x8] sm:$0xff]  ;;  %v331_v15 = vld [vmem:[%s1121_s13 + $0x18] sm:$0xff]  ;;  %v334_v17 = vld [vmem:[%s1128_s9 + $0x10] sm:$0xff]  ;;  %v369_v23 = vsel %vm336_vm0, %v365_v21, 0.0  ;;  %v375_v30 = vsel %vm336_vm0, %v367_v27, 0.0  ;;  %s708_s22 = sshll.u32 %s1256_s14, 3 }
  0x4f   : > { %723 = vmatpush.msra.mxu2 %v471_v6  ;;  %539 = vmatpush.msra.mxu1 %v467_v9  ;;  %v329_v16 = vld [vmem:[%s1121_s13 + $0x8] sm:$0xff]  ;;  %v352_v18 = vsel %vm336_vm0, %v333_v14, 0.0  ;;  %v346_v19 = vsel %vm336_vm0, %v331_v15, 0.0  ;;  %v335_v22 = vld [vmem:[%s1128_s9 + $0x18] sm:$0xff]  ;;  %v355_v25 = vsel %vm336_vm0, %v334_v17, 0.0  ;;  %v368_v26 = vmul.f32 %v331_v15, %v331_v15  ;;  %s326_s25 = scalar_lea.vmem %s1239_s5, %s708_s22 }
  0x50   : > { %727 = vmatpush.msra.mxu3 %v467_v9  ;;  %499 = vmatpush.msra.mxu0 %v470_v10  ;;  %v340_v20 = vsel %vm336_vm0, %v329_v16, 0.0  ;;  %v358_v24 = vsel %vm336_vm0, %v335_v22, 0.0  ;;  %v366_v28 = vmul.f32 %v329_v16, %v329_v16  ;;  %v383_v32 = vmul.f32 %v334_v17, %v334_v17 }
  0x51   : > { %724 = vmatpush.msra.mxu2 %v470_v10  ;;  %540 = vmatpush.msra.mxu1 %v466_v11  ;;  %v378_v29 = vsel %vm336_vm0, %v368_v26, 0.0  ;;  %v382_v33 = vmul.f32 %v333_v14, %v333_v14  ;;  %v384_v38 = vmul.f32 %v335_v22, %v335_v22 }
  0x52   : > { %728 = vmatpush.msra.mxu3 %v466_v11  ;;  %500 = vmatpush.msra.mxu0 %v469_v12  ;;  %v372_v31 = vsel %vm336_vm0, %v366_v28, 0.0  ;;  %v391_v35 = vsel %vm336_vm0, %v383_v32, 0.0 }
  0x53   : > { %725 = vmatpush.msra.mxu2 %v469_v12  ;;  %541 = vmatpush.msra.mxu1 %v465_v13  ;;  %v388_v36 = vsel %vm336_vm0, %v382_v33, 0.0  ;;  %v394_v39 = vsel %vm336_vm0, %v384_v38, 0.0 }
  0x54   : > { %729 = vmatpush.msra.mxu3 %v465_v13  ;;  %709 = vmatmul.msk.f32.vlgmr.msra.gmra.mxu0 %vm336_vm0, %v1143_v2 }
  0x55   : > { %711 = vmatmul.msk.f32.vlgmr.msra.gmra.mxu2 %vm336_vm0, %v334_v17  ;;  %713 = vmatmul.msk.f32.vlgmr.msra.gmra.mxu1 %vm336_vm0, %v328_v5 }
  0x56   : > { %715 = vmatmul.msk.f32.vlgmr.msra.gmra.mxu3 %vm336_vm0, %v330_v4  ;;  %353 = vadd.xlane.f32.xlu2 %v352_v18 }
  0x57   : > { %347 = vadd.xlane.f32.xlu1 %v346_v19  ;;  %341 = vadd.xlane.f32.xlu0 %v340_v20 }
  0x5c   : > { %710 = vmatmul.msk.f32.gmra.mxu0 %vm336_vm0, %v333_v14 }
  0x5d   : > { %712 = vmatmul.msk.f32.gmra.mxu2 %vm336_vm0, %v335_v22  ;;  %714 = vmatmul.msk.f32.gmra.mxu1 %vm336_vm0, %v329_v16 }
  0x5e   : > { %716 = vmatmul.msk.f32.gmra.mxu3 %vm336_vm0, %v331_v15  ;;  %370 = vadd.xlane.f32.xlu2 %v369_v23 }
  0x5f   : > { %359 = vadd.xlane.f32.xlu1 %v358_v24  ;;  %356 = vadd.xlane.f32.xlu0 %v355_v25  ;;  %v555_v24 = vld [vmem:[%s1238_s4] sm:$0x3] }
  0x66   : > { %379 = vadd.xlane.f32.xlu2 %v378_v29 }
  0x67   : > { %376 = vadd.xlane.f32.xlu1 %v375_v30  ;;  %373 = vadd.xlane.f32.xlu0 %v372_v31  ;;  %v556_v31 = vperm.slane %v555_v24, 0 }
  0x6e   : > { %392 = vadd.xlane.f32.xlu2 %v391_v35 }
  0x6f   : > { %389 = vadd.xlane.f32.xlu1 %v388_v36  ;;  %386 = vadd.xlane.f32.xlu0 %v385_v37 }
  0x77   : > { %395 = vadd.xlane.f32.xlu0 %v394_v39 }
  0xc0   : > { %v351_v40 = vpop.xlane.xlu2 %350  ;;  %v345_v41 = vpop.xlane.xlu1 %344 }
  0xc1   : > { %v339_v42 = vpop.xlane.xlu0 %338 }
  0xc2   : > { %v361_v52 = vadd.f32 %v351_v40, %v339_v42  ;;  %v569_v40 = vperm.slane %v555_v24, 1 }
  0xc4   : > { %v401_v55 = vmul.f32 0.015625, %v361_v52 }
  0xc6   : > { %v409_v0 = vmul.f32 %v401_v55, %v401_v55 }
  0xc9   : > { %v354_v43 = vpop.xlane.xlu2 %353 }
  0xca   : > { %v348_v44 = vpop.xlane.xlu1 %347  ;;  %v342_v45 = vpop.xlane.xlu0 %341 }
  0xcb   : > { %v362_v53 = vadd.f32 %v354_v43, %v342_v45  ;;  %v557_v43 = vmul.f32 %v556_v31, %v401_v55 }
  0xcd   : > { %v402_v56 = vmul.f32 0.015625, %v362_v53 }
  0xcf   : > { %v410_v1 = vmul.f32 %v402_v56, %v402_v56 }
  0xd1   : > { %v371_v46 = vpop.xlane.xlu2 %370  ;;  %v502_v16 = vpop.f32.mrf.mxu0 }
  0xd2   : > { %v360_v47 = vpop.xlane.xlu1 %359  ;;  %v357_v48 = vpop.xlane.xlu0 %356 }
  0xd3   : > { %v363_v54 = vadd.f32 %v357_v48, %v345_v41  ;;  %v364_v3 = vadd.f32 %v360_v47, %v348_v44  ;;  %v543_v17 = vpop.f32.mrf.mxu1  ;;  %v558_v44 = vmul.f32 %v556_v31, %v402_v56 }
  0xd5   : > { %v1180_v57 = vmul.f32 0.015625, %v363_v54  ;;  %v1184_v11 = vmul.f32 0.015625, %v364_v3 }
  0xd7   : > { %v411_v4 = vmul.f32 %v1180_v57, %v1180_v57  ;;  %v412_v21 = vmul.f32 %v1184_v11, %v1184_v11 }
  0xd8   : > { %v508_v32 = vpop.f32.mrf.mxu2 }
  0xd9   : > { %v380_v50 = vpop.xlane.xlu2 %379  ;;  %v549_v33 = vpop.f32.mrf.mxu3 }
  0xda   : > { %v377_v49 = vpop.xlane.xlu1 %376  ;;  %v374_v51 = vpop.xlane.xlu0 %373  ;;  %v550_v47 = vadd.f32 %v549_v33, %v508_v32 }
  0xdb   : > { %v505_v35 = vpop.f32.mrf.mxu0  ;;  %v546_v36 = vpop.f32.mrf.mxu1 }
  0xdc   : > { %v547_v45 = vadd.f32 %v546_v36, %v505_v35 }
  0xde   : > { %v562_v56 = vsub.f32 %v547_v45, %v558_v44 }
  0xe1   : > { %v393_v60 = vpop.xlane.xlu2 %392 }
  0xe2   : > { %v390_v58 = vpop.xlane.xlu1 %389  ;;  %v387_v61 = vpop.xlane.xlu0 %386  ;;  %v399_v62 = vadd.f32 %v393_v60, %v377_v49 }
  0xe3   : > { %v398_v59 = vadd.f32 %v390_v58, %v374_v51  ;;  %v397_v63 = vadd.f32 %v387_v61, %v371_v46  ;;  %v559_v51 = vmul.f32 %v556_v31, %v1180_v57 }
  0xe4   : > { %v407_v5 = vmul.f32 0.015625, %v399_v62 }
  0xe5   : > { %v406_v2 = vmul.f32 0.015625, %v398_v59  ;;  %v405_v6 = vmul.f32 0.015625, %v397_v63  ;;  %v563_v60 = vsub.f32 %v550_v47, %v559_v51  ;;  %v511_v63 = vpop.f32.mrf.mxu2 }
  0xe6   : > { %v415_v8 = vsub.f32 %v407_v5, %v411_v4 }
  0xe7   : > { %v414_v7 = vsub.f32 %v406_v2, %v410_v1  ;;  %v413_v9 = vsub.f32 %v405_v6, %v409_v0  ;;  %v552_v0 = vpop.f32.mrf.mxu3 }
  0xe8   : > { %v419_v12 = vmax.f32 %v415_v8, 0.0 }
  0xe9   : > { %v418_v10 = vmax.f32 %v414_v7, 0.0  ;;  %v417_v13 = vmax.f32 %v413_v9, 0.0  ;;  %v553_v9 = vadd.f32 %v552_v0, %v511_v63 }
  0xea   : > { %v396_v15 = vpop.xlane.xlu0 %395  ;;  %v423_v18 = vadd.f32 1e-05, %v419_v12 }
  0xeb   : > { %v422_v14 = vadd.f32 1e-05, %v418_v10  ;;  %v1186_v19 = vadd.f32 1e-05, %v417_v13  ;;  %v400_v20 = vadd.f32 %v396_v15, %v380_v50  ;;  %v544_v50 = vadd.f32 %v543_v17, %v502_v16 }
  0xec   : > { %vm451_vm6 = vweird.f32 %v423_v18 }
  0xed   : > { %798 = vrsqrt.f32 %v422_v14  ;;  %v408_v22 = vmul.f32 0.015625, %v400_v20  ;;  %vm441_vm3 = vweird.f32 %v422_v14  ;;  %vm431_vm8 = vweird.f32 %v1186_v19 }
  0xee   : > { %800 = vrsqrt.f32 %v423_v18  ;;  %v561_v57 = vsub.f32 %v544_v50, %v557_v43 }
  0xef   : > { %802 = vrsqrt.f32 %v1186_v19  ;;  %v416_v23 = vsub.f32 %v408_v22, %v412_v21 }
  0xf1   : > { %v420_v25 = vmax.f32 %v416_v23, 0.0 }
  0xf3   : > { %v799_v26 = vpop.eup %798  ;;  %v1195_v29 = vadd.f32 1e-05, %v420_v25 }
  0xf4   : > { %v801_v27 = vpop.eup %800  ;;  %v436_v28 = vmul.f32 %v799_v26, %v422_v14  ;;  %vm442_vm1 = vweird.f32 %v799_v26  ;;  %v560_v14 = vmul.f32 %v556_v31, %v1184_v11 }
  0xf5   : > { %v803_v30 = vpop.eup %802  ;;  %v446_v34 = vmul.f32 %v801_v27, %v423_v18  ;;  %804 = vrsqrt.f32 %v1195_v29  ;;  %vm452_vm2 = vweird.f32 %v801_v27  ;;  %vm443_vm5 = vmor %vm441_vm3, %vm442_vm1  ;;  %vm461_vm11 = vweird.f32 %v1195_v29 }
  0xf6   : > { %v437_v37 = vmul.f32 %v799_v26, %v436_v28  ;;  %v426_v38 = vmul.f32 %v803_v30, %v1186_v19  ;;  %vm432_vm4 = vweird.f32 %v803_v30  ;;  %vm453_vm7 = vmor %vm451_vm6, %vm452_vm2  ;;  %v564_v16 = vsub.f32 %v553_v9, %v560_v14 }
  0xf7   : > { %v447_v39 = vmul.f32 %v801_v27, %v446_v34  ;;  %vm433_vm9 = vmor %vm431_vm8, %vm432_vm4 }
  0xf8   : > { %v438_v41 = vmul.f32 0.5, %v437_v37  ;;  %v427_v42 = vmul.f32 %v803_v30, %v426_v38 }
  0xf9   : > { %v448_v46 = vmul.f32 0.5, %v447_v39 }
  0xfa   : > { %v439_v48 = vsub.f32 1.5, %v438_v41  ;;  %v428_v49 = vmul.f32 0.5, %v427_v42 }
  0xfb   : > { %v449_v52 = vsub.f32 1.5, %v448_v46  ;;  %v805_v53 = vpop.eup %804 }
  0xfc   : > { %v440_v54 = vmul.f32 %v799_v26, %v439_v48  ;;  %v429_v55 = vsub.f32 1.5, %v428_v49  ;;  %v456_v59 = vmul.f32 %v805_v53, %v1195_v29  ;;  %vm462_vm10 = vweird.f32 %v805_v53 }
  0xfd   : > { %v450_v58 = vmul.f32 %v801_v27, %v449_v52  ;;  %vm463_vm12 = vmor %vm461_vm11, %vm462_vm10 }
  0xfe   : > { %v444_v61 = vsel %vm443_vm5, %v799_v26, %v440_v54  ;;  %v430_v62 = vmul.f32 %v803_v30, %v429_v55  ;;  %v457_v3 = vmul.f32 %v805_v53, %v456_v59 }
  0xff   : > { %v566_v1 = vmul.f32 %v562_v56, %v444_v61  ;;  %v454_v2 = vsel %vm453_vm7, %v801_v27, %v450_v58 }
 0x100   : > { %v567_v4 = vmul.f32 %v563_v60, %v454_v2  ;;  %v434_v5 = vsel %vm433_vm9, %v803_v30, %v430_v62  ;;  %v458_v8 = vmul.f32 0.5, %v457_v3 }
 0x101   : > { %v571_v6 = vadd.f32 %v569_v40, %v566_v1  ;;  %v565_v7 = vmul.f32 %v561_v57, %v434_v5 }
 0x102   : > { %v572_v10 = vadd.f32 %v569_v40, %v567_v4  ;;  %v459_v13 = vsub.f32 1.5, %v458_v8 }
 0x103   : > { %575 = vst.msk [vmem:[%s326_s25 + $0x8] sm:$0xff] %vm336_vm0, %v571_v6  ;;  %v570_v12 = vadd.f32 %v569_v40, %v565_v7 }
 0x104   : > { %576 = vst.msk [vmem:[%s326_s25 + $0x10] sm:$0xff] %vm336_vm0, %v572_v10  ;;  %v460_v15 = vmul.f32 %v805_v53, %v459_v13 }
 0x105   : > { %574 = vst.msk [vmem:[%s326_s25] sm:$0xff] %vm336_vm0, %v570_v12 }
 0x106   : > { %v464_v17 = vsel %vm463_vm12, %v805_v53, %v460_v15 }
 0x107   : > { %v568_v18 = vmul.f32 %v564_v16, %v464_v17 }
 0x109   : > { %v573_v19 = vadd.f32 %v569_v40, %v568_v18 }
 0x10b   : > { %577 = vst.msk [vmem:[%s326_s25 + $0x18] sm:$0xff] %vm336_vm0, %v573_v19 }
 0x10c PF: > { %p19_p4 = scmp.ge.s32.totalorder %s1061_s12, 6   ;;  %s1251_s18 = smov %s964_s19 }
 0x10d   : > { %s1252_s19 = smov %s968_s20  ;;  %s1253_s20 = smov %s1072_s16 }
 0x10e   : > { %s1254_s21 = smov %s1061_s12  ;;  %21 = sbr.rel (!%p19_p4) target bundleno = 9 (0x9), region = 101 }
 0x113   :  { %600 = vsyncpa [#allocation3], 1 }
 0x114   :  { %602 = vsyncpa [#allocation3 + $0x1], 1 }
 0x115   :  { %603 = vsyncpa [#allocation5], 1 }
 0x116   :  { %605 = vsyncpa [#allocation5 + $0x1], 1 }
 0x117   :  { %606 = vsyncpa [#allocation8], 1 }

</bundles_post_ra>
